<compile_context>
chip_gen: v7x
topology: tpu7x:2x2x1
jax: 0.10.0
libtpu: 0.0.40
codegen_flags: <defaults>
</compile_context>

<pallas_src>
import jax
import jax.numpy as jnp
from jax.experimental import pallas as pl
from jax.experimental.pallas import tpu as pltpu

_LANE = 128


def _round_up(x, m):
    return ((x + m - 1) // m) * m


def _vmem_capacity_bytes():
    """Per-core VMEM capacity; conservative (v7x-sized) fallback."""
    try:
        info = pltpu.get_tpu_info()
        cap = getattr(info, "vmem_capacity_bytes", None)
        if cap:
            return int(cap)
    except Exception:
        pass
    return 64 << 20


def _make_head_kernel(tile_hw, acc_lanes, groups, hw_total, needs_hw_mask):
    def _accumulate(x_ref, acc_ref, hw, masked):
        x = x_ref[...]                                     # [tB, C, tHW], native dtype
        if masked:
            col = jax.lax.broadcasted_iota(jnp.int32, x.shape, 2)
            valid = (col + hw * tile_hw) < hw_total
            x = jnp.where(valid, x, jnp.zeros_like(x))
        # Fold the 128-lane groups together with plain VPU adds (no XLU work);
        # the cast to f32 happens per-group inside the accumulation.
        part = x[:, :, 0:acc_lanes].astype(jnp.float32)
        for g in range(1, groups):
            part = part + x[:, :, g * acc_lanes:(g + 1) * acc_lanes].astype(jnp.float32)
        acc_ref[...] += part                               # [tB, C, acc_lanes] f32

    def kernel(x_ref, w_ref, b_ref, o_ref, acc_ref):
        # x_ref: [tB, C, tHW]   w_ref: [C, Npad] (pre-scaled by 1/HW)
        # b_ref: [1, Npad]      o_ref: [tB, Npad]
        # acc_ref (VMEM scratch): [tB, C, acc_lanes] f32
        hw = pl.program_id(1)
        last = pl.num_programs(1) - 1

        @pl.when(hw == 0)
        def _zero():
            acc_ref[...] = jnp.zeros_like(acc_ref)

        if needs_hw_mask:
            # Only the last HW tile can be ragged -> only it pays for the mask.
            @pl.when(hw < last)
            def _body():
                _accumulate(x_ref, acc_ref, hw, masked=False)

            @pl.when(hw == last)
            def _tail():
                _accumulate(x_ref, acc_ref, hw, masked=True)
        else:
            _accumulate(x_ref, acc_ref, hw, masked=False)

        @pl.when(hw == last)
        def _finish():
            # One cross-lane reduce + relayout total (not per step), then MXU.
            pooled = jnp.sum(acc_ref[...], axis=-1)        # [tB, C] f32
            logits = jnp.dot(pooled, w_ref[...],
                             preferred_element_type=jnp.float32)  # [tB, Npad]
            o_ref[...] = (logits + b_ref[...]).astype(o_ref.dtype)

    return kernel


def _choose_tiles(B, C, HW, itemsize, vmem_cap):
    """Pick (tile_b, tile_hw) with correct VMEM accounting (sublane/lane padding
    and the f32 accumulator included), generation-aware budgets, and >= 2 batch
    blocks on dual-TensorCore (64 MiB VMEM) parts when the batch allows."""
    budget = max(8 << 20, min(vmem_cap // 3, 40 << 20))
    sub = 8 * max(1, 4 // itemsize)          # sublane tile: f32->8, bf16->16, int8->32
    cpad = _round_up(C, sub)
    cpad32 = _round_up(C, 8)

    def acc_bytes(tb):
        return tb * cpad32 * _LANE * 4       # f32 accumulator scratch

    def vmem_use(tb, thw):
        inp = 2 * tb * cpad * _round_up(thw, _LANE) * itemsize   # double-buffered input
        return inp + acc_bytes(tb)

    min_thw = min(HW, _LANE)

    # --- tile_b: full batch if it fits, else the largest multiple of 8 that does.
    if B <= 8 or vmem_use(B, min_thw) <= budget:
        tile_b = B
    else:
        tile_b = 8
        for cand in range(min(B, 512) // 8 * 8, 8, -8):
            if cand < B and vmem_use(cand, min_thw) <= budget:
                tile_b = cand
                break
    # Dual-TensorCore parts (v7x: 64 MiB VMEM/TC): keep >= 2 blocks on the
    # 'parallel' B axis so the grid can shard across both cores.
    if vmem_cap <= (64 << 20) and tile_b == B and B >= 16:
        half = (B // 2 + 7) // 8 * 8
        if half < B:
            tile_b = half

    # --- tile_hw: whole spatial extent if lane-aligned and it fits, otherwise
    # the largest multiple of 128 within budget (ragged tail masked in-kernel).
    groups_in_hw = HW // _LANE
    lane_bytes = 2 * tile_b * cpad * itemsize
    groups_budget = max(1, (budget - acc_bytes(tile_b)) // max(1, lane_bytes) // _LANE)
    if HW <= _LANE:
        tile_hw = HW
    elif HW % _LANE == 0 and groups_in_hw <= groups_budget:
        tile_hw = HW
    else:
        tile_hw = min(groups_in_hw, groups_budget) * _LANE
    return tile_b, tile_hw


def prepare_head_params(fc_weight, fc_bias, spatial_size):
    """One-time parameter prep: transpose to [C, Npad], zero-pad num_classes up
    to a lane-dense multiple of 128, and fold the 1/(H*W) pooling scale into
    the weight so the kernel's finish step is just matmul + bias."""
    N, C = fc_weight.shape
    n_pad = _round_up(max(N, 1), _LANE)
    inv_hw = 1.0 / float(spatial_size)
    w = jnp.zeros((C, n_pad), jnp.float32).at[:, :N].set(
        fc_weight.astype(jnp.float32).T * inv_hw)
    b = jnp.zeros((1, n_pad), jnp.float32).at[:, :N].set(
        fc_bias.astype(jnp.float32).reshape(1, N))
    return w, b, N


def classification_head_from_features(feat_nchw, w_padded, b_padded, num_classes,
                                       *, tile_b=None, tile_hw=None):
    """feat_nchw: [B, C, H, W] last encoder feature map (NCHW, as in PyTorch)
       w_padded:  [C, Npad]   (prepare_head_params output, already / H*W)
       b_padded:  [1, Npad]
       returns:   [B, num_classes] float32 logits."""
    B, C, H, W = feat_nchw.shape
    HW = H * W
    n_pad = w_padded.shape[1]

    # Free reshape of the contiguous NCHW tensor -- no transpose, one HBM pass.
    x = feat_nchw.reshape(B, C, HW)

    vmem_cap = _vmem_capacity_bytes()
    auto_tb, auto_thw = _choose_tiles(
        B, C, HW, jnp.dtype(feat_nchw.dtype).itemsize, vmem_cap)
    tile_b = auto_tb if tile_b is None else tile_b
    tile_hw = auto_thw if tile_hw is None else tile_hw
    if tile_hw != HW and tile_hw % _LANE != 0:
        raise ValueError("tile_hw must equal H*W or be a multiple of 128")
    if tile_b != B and tile_b % 8 != 0:
        raise ValueError("tile_b must equal B or be a multiple of 8")

    needs_hw_mask = (HW % tile_hw) != 0
    if tile_hw % _LANE == 0:
        acc_lanes, groups = _LANE, tile_hw // _LANE
    else:                       # tile_hw == HW (single step, possibly < 128 lanes)
        acc_lanes, groups = tile_hw, 1

    grid = (pl.cdiv(B, tile_b), pl.cdiv(HW, tile_hw))
    vmem_limit = int(max(32 << 20, min(vmem_cap - (16 << 20), 64 << 20)))

    out = pl.pallas_call(
        _make_head_kernel(tile_hw, acc_lanes, groups, HW, needs_hw_mask),
        out_shape=jax.ShapeDtypeStruct((B, n_pad), jnp.float32),
        grid=grid,
        in_specs=[
            pl.BlockSpec((tile_b, C, tile_hw), lambda bi, hw: (bi, 0, hw)),
            pl.BlockSpec((C, n_pad), lambda bi, hw: (0, 0)),
            pl.BlockSpec((1, n_pad), lambda bi, hw: (0, 0)),
        ],
        out_specs=pl.BlockSpec((tile_b, n_pad), lambda bi, hw: (bi, 0)),
        scratch_shapes=[pltpu.VMEM((tile_b, C, acc_lanes), jnp.float32)],
        compiler_params=pltpu.CompilerParams(
            dimension_semantics=("parallel", "arbitrary"),
            vmem_limit_bytes=vmem_limit),
    )(x, w_padded, b_padded)

    return out[:, :num_classes]


def classification_head(feat_nchw, fc_weight, fc_bias, *, tile_b=None, tile_hw=None):
    """Convenience wrapper: fc_weight [num_classes, C] / fc_bias [num_classes]
       in PyTorch nn.Linear layout; prep is done here (hoist prepare_head_params
       out of the loop in real use)."""
    H, W = feat_nchw.shape[2], feat_nchw.shape[3]
    w, b, n = prepare_head_params(fc_weight, fc_bias, H * W)
    return classification_head_from_features(
        feat_nchw, w, b, n, tile_b=tile_b, tile_hw=tile_hw)


if __name__ == "__main__":
    key = jax.random.PRNGKey(0)
    k1, k2, k3, kw, kb = jax.random.split(key, 5)

    num_classes = 10
    C = 32
    fc_weight = jax.random.normal(kw, (num_classes, C), dtype=jnp.float32) * 0.05
    fc_bias = jax.random.normal(kb, (num_classes,), dtype=jnp.float32) * 0.05

    def reference(feat):
        pooled = jnp.mean(feat.astype(jnp.float32), axis=(2, 3))    # AdaptiveAvgPool2d(1)
        return pooled @ fc_weight.T + fc_bias                        # nn.Linear

    # Case 1: HW = 256 with forced 128-lane spatial tiles -> 2-step grid reduction.
    feat1 = jax.random.normal(k1, (2, C, 16, 16), dtype=jnp.float32)
    out1 = jax.block_until_ready(
        classification_head(feat1, fc_weight, fc_bias, tile_hw=128))
    assert out1.shape == (2, num_classes)
    assert jnp.allclose(out1, reference(feat1), atol=1e-4, rtol=1e-4)

    # Case 2: ragged spatial extent (HW = 196, tile 128) -> masked tail step only.
    feat2 = jax.random.normal(k2, (2, C, 14, 14), dtype=jnp.float32)
    out2 = jax.block_until_ready(
        classification_head(feat2, fc_weight, fc_bias, tile_hw=128))
    assert out2.shape == (2, num_classes)
    assert jnp.allclose(out2, reference(feat2), atol=1e-4, rtol=1e-4)

    # Case 3: auto-chosen tiles (single HW step at these small shapes).
    out3 = jax.block_until_ready(classification_head(feat1, fc_weight, fc_bias))
    assert jnp.allclose(out3, reference(feat1), atol=1e-4, rtol=1e-4)

    # Case 4: partial batch block (B=12, tile_b=8) -> OOB output rows masked.
    feat4 = jax.random.normal(k3, (12, C, 8, 8), dtype=jnp.float32)
    out4 = jax.block_until_ready(
        classification_head(feat4, fc_weight, fc_bias, tile_b=8))
    assert out4.shape == (12, num_classes)
    assert jnp.allclose(out4, reference(feat4), atol=1e-4, rtol=1e-4)

    print("KERNEL_OK")
</pallas_src>

<mosaic_0001>
module attributes {stable_mosaic.version = 11 : i64} {
  func.func @kernel(%arg0: i32, %arg1: i32, %arg2: memref<2x32x128xf32, #tpu.memory_space<vmem>>, %arg3: memref<32x128xf32, #tpu.memory_space<vmem>>, %arg4: memref<1x128xf32, #tpu.memory_space<vmem>>, %arg5: memref<2x128xf32, #tpu.memory_space<vmem>>, %arg6: memref<2x32x128xf32, #tpu.memory_space<vmem>>) attributes {dimension_semantics = [#tpu.dimension_semantics<parallel>, #tpu.dimension_semantics<arbitrary>], iteration_bounds = array<i64: 1, 2>, scalar_prefetch = 0 : i64, scratch_operands = 1 : i64, tpu.core_type = #tpu.core_type<tc>, window_params = [{transform_indices = @transform_0, window_bounds = array<i64: 2, 32, 128>}, {pipeline_mode = #tpu.pipeline_mode<synchronous>, transform_indices = @transform_1, window_bounds = array<i64: 32, 128>}, {pipeline_mode = #tpu.pipeline_mode<synchronous>, transform_indices = @transform_2, window_bounds = array<i64: 1, 128>}, {transform_indices = @transform_3, window_bounds = array<i64: 2, 128>}]} {
    %c0_i32 = arith.constant 0 : i32
    %0 = arith.cmpi eq, %arg1, %c0_i32 : i32
    %1 = arith.extui %0 : i1 to i32
    %c0_i32_0 = arith.constant 0 : i32
    %2 = arith.cmpi ne, %1, %c0_i32_0 : i32
    scf.if %2 {
      %cst = arith.constant 0.000000e+00 : f32
      %10 = vector.broadcast %cst : f32 to vector<2x32x128xf32>
      %c0_10 = arith.constant 0 : index
      %c0_11 = arith.constant 0 : index
      %c0_12 = arith.constant 0 : index
      %11 = vector.load %arg6[%c0_10, %c0_11, %c0_12] : memref<2x32x128xf32, #tpu.memory_space<vmem>>, vector<2x32x128xf32>
      tpu.vector_store %arg6[%c0_10, %c0_11, %c0_12], %10 {strides = array<i32>} : memref<2x32x128xf32, #tpu.memory_space<vmem>>, vector<2x32x128xf32>,
    } else {
    }
    %c0 = arith.constant 0 : index
    %c0_1 = arith.constant 0 : index
    %c0_2 = arith.constant 0 : index
    %3 = vector.load %arg2[%c0, %c0_1, %c0_2] : memref<2x32x128xf32, #tpu.memory_space<vmem>>, vector<2x32x128xf32>
    %c0_3 = arith.constant 0 : index
    %c0_4 = arith.constant 0 : index
    %c0_5 = arith.constant 0 : index
    %4 = vector.load %arg6[%c0_3, %c0_4, %c0_5] : memref<2x32x128xf32, #tpu.memory_space<vmem>>, vector<2x32x128xf32>
    %5 = arith.addf %4, %3 : vector<2x32x128xf32>
    %c0_6 = arith.constant 0 : index
    %c0_7 = arith.constant 0 : index
    %c0_8 = arith.constant 0 : index
    %6 = vector.load %arg6[%c0_6, %c0_7, %c0_8] : memref<2x32x128xf32, #tpu.memory_space<vmem>>, vector<2x32x128xf32>
    tpu.vector_store %arg6[%c0_6, %c0_7, %c0_8], %5 {strides = array<i32>} : memref<2x32x128xf32, #tpu.memory_space<vmem>>, vector<2x32x128xf32>,
    %c1_i32 = arith.constant 1 : i32
    %7 = arith.cmpi eq, %arg1, %c1_i32 : i32
    %8 = arith.extui %7 : i1 to i32
    %c0_i32_9 = arith.constant 0 : i32
    %9 = arith.cmpi ne, %8, %c0_i32_9 : i32
    scf.if %9 {
      %c0_10 = arith.constant 0 : index
      %c0_11 = arith.constant 0 : index
      %c0_12 = arith.constant 0 : index
      %10 = vector.load %arg6[%c0_10, %c0_11, %c0_12] : memref<2x32x128xf32, #tpu.memory_space<vmem>>, vector<2x32x128xf32>
      %cst = arith.constant dense<0.000000e+00> : vector<2x32xf32>
      %11 = vector.multi_reduction <add>, %10, %cst [2] : vector<2x32x128xf32> to vector<2x32xf32>
      %c0_13 = arith.constant 0 : index
      %c0_14 = arith.constant 0 : index
      %12 = vector.load %arg3[%c0_13, %c0_14] : memref<32x128xf32, #tpu.memory_space<vmem>>, vector<32x128xf32>
      %cst_15 = arith.constant dense<0.000000e+00> : vector<2x128xf32>
      %13 = tpu.matmul %11, %12, %cst_15 {dimension_numbers = #tpu.dot_dimension_numbers<[1], [0], [0], [1], [0, 0, 1, 1], [], []>} : vector<2x32xf32>, vector<32x128xf32>, vector<2x128xf32> -> vector<2x128xf32>
      %c0_16 = arith.constant 0 : index
      %c0_17 = arith.constant 0 : index
      %14 = vector.load %arg4[%c0_16, %c0_17] : memref<1x128xf32, #tpu.memory_space<vmem>>, vector<1x128xf32>
      %15 = vector.broadcast %14 : vector<1x128xf32> to vector<2x128xf32>
      %16 = arith.addf %13, %15 : vector<2x128xf32>
      %c0_18 = arith.constant 0 : index
      %c0_19 = arith.constant 0 : index
      %17 = vector.load %arg5[%c0_18, %c0_19] : memref<2x128xf32, #tpu.memory_space<vmem>>, vector<2x128xf32>
      tpu.vector_store %arg5[%c0_18, %c0_19], %16 {strides = array<i32>} : memref<2x128xf32, #tpu.memory_space<vmem>>, vector<2x128xf32>,
    } else {
    }
    return
  }
  func.func @transform_0(%arg0: i32, %arg1: i32) -> (i32, i32, i32) {
    %c0_i32 = arith.constant 0 : i32
    %c0_i32_0 = arith.constant 0 : i32
    return %arg0, %c0_i32, %arg1 : i32, i32, i32
  }
  func.func @transform_1(%arg0: i32, %arg1: i32) -> (i32, i32) {
    %c0_i32 = arith.constant 0 : i32
    %c0_i32_0 = arith.constant 0 : i32
    %c0_i32_1 = arith.constant 0 : i32
    return %c0_i32, %c0_i32_0 : i32, i32
  }
  func.func @transform_2(%arg0: i32, %arg1: i32) -> (i32, i32) {
    %c0_i32 = arith.constant 0 : i32
    %c0_i32_0 = arith.constant 0 : i32
    %c0_i32_1 = arith.constant 0 : i32
    return %c0_i32, %c0_i32_0 : i32, i32
  }
  func.func @transform_3(%arg0: i32, %arg1: i32) -> (i32, i32) {
    %c0_i32 = arith.constant 0 : i32
    %c0_i32_0 = arith.constant 0 : i32
    return %arg0, %c0_i32 : i32, i32
  }
}

</mosaic_0001>

<bundles_post_ra>
// kernel: tpu_custom_call.1
= control target key start
LH: loop header
LB: loop body
LE: loop exit
PB: predicated region body
PF: predicated region fallthrough
CT: control target
= control target key end

     0   :  { %8 = vsyncpa [#allocation4], 0  ;;  %s1007_s0 = inlined_call_operand.hbm [shape: f32[2,32,256], index: 0, kind: input, shape index: {}]   ;;  %s1008_s1 = inlined_call_operand.hbm [shape: f32[32,128], index: 1, kind: input, shape index: {}]   ;;  %s1009_s2 = inlined_call_operand.vmem [shape: f32[1,128], index: 2, kind: input, shape index: {}]   ;;  %s1010_s3 = inlined_call_operand.hbm [shape: f32[2,128], index: 3, kind: output, shape index: {}]  }
   0x1   :  { %10 = vsyncpa [#allocation4 + $0x1], 0 }
   0x2   :  { %11 = vsyncpa [#allocation7], 0 }
   0x3   :  { %12 = vsyncpa [#allocation5], 0  ;;  %s802_s12 = smov 0   ;;  %s804_s13 = smov 0  }
   0x4   :  { %s806_s14 = smov 0   ;;  %s808_s15 = smov 0  }
   0x5   :  { %s810_s16 = smov 0   ;;  %s812_s17 = smov 0  }
   0x6 LB: > { %s509_s18 = sadd.s32 4294967295, %s770_s17   ;;  %p46_p0 = scmp.ne.s32.totalorder %s758_s14, %s754_s13  ;;  %s770_s17 = sphi %s812_s17, %s18_s17   ;;  %s766_s16 = sphi %s810_s16, %s1031_s16   ;;  %s762_s15 = sphi %s808_s15, %s1030_s15   ;;  %s758_s14 = sphi %s806_s14, %s1029_s14   ;;  %s754_s13 = sphi %s804_s13, %s1028_s13   ;;  %s750_s12 = sphi %s802_s12, %s1027_s12  }
   0x7   : > { %p47_p1 = scmp.eq.s32.totalorder %s770_s17, 0  ;;  %p52_p2 = scmp.ne.s32.totalorder %s754_s13, %s750_s12 }
   0x8   : > { %p837_p3 = scmp.eq.s32.totalorder %s509_s18, 0  ;;  %p510_p4 = scmp.ge.s32.totalorder %s770_s17, 1 }
   0x9   : > { %p48_p5 = por %p47_p1, %p46_p0  ;;  %p131_p6 = scmp.lt.s32.totalorder %s770_s17, 3 }
   0xa   : > { %s1016_s19 = scalar_select %p837_p3, 1, 0 }
   0xb   : > { %p845_p7 = por %p837_p3, %p52_p2  ;;  %p849_p8 = pnand %p510_p4, %p131_p6 }
   0xc   : > { %s772_s22 = smov [#allocation6]   ;;  %p567_p11 = scmp.lt.s32.totalorder %s770_s17, 2 }
   0xd   : > { %s1017_s20 = scalar_select %p845_p7, 1, 0 }
   0xe   : > { %s1018_s21 = scalar_select %p849_p8, 1, 0 }
   0xf   : > { %s143_s23 = sshll.u32 %s772_s22, 4  ;;  %p558_p9 = pneg %p849_p8  ;;  %s144_s23 = int_to_ptr.vmem [resolvable:$true] %s143_s23 }
  0x10   : > { %s39_s25 = sadd.s32 1, %s758_s14  ;;  %p863_p12 = pnand %p567_p11, %p48_p5 }
  0x11   : > { %p857_p10 = pnand %p558_p9, %p837_p3  ;;  %s628_s29 = scalar_lea.hbm %s1008_s1, 512 }
  0x12   : > { %s1020_s26 = scalar_select %p863_p12, 1, 0 }
  0x13   : > { %p629_p13 = scmp.ne.s32.totalorder %s1008_s1, %s628_s29  ;;  %p630_p0 = pneg %p857_p10 }
  0x14   : > { %p635_p4 = scmp.lt.u32.totalorder %s628_s29, %s1008_s1 }
  0x15   : > { %p631_p1 = pnand %p630_p0, %p629_p13 }
  0x17   : > { %p632_p2 = pneg %p631_p1 }
  0x19   : > { %p637_p5 = pnand %p635_p4, %p632_p2 }
  0x1b   : > { %640 = shalt.err (!%p637_p5)
}
  0x1c   : > { %s641_s7 = scalar_lea.vmem %s144_s23, 512  ;;  %p649_p3 = scmp.lt.s32.totalorder %s144_s23, %s144_s23 }
  0x1d   : > { %p642_p6 = scmp.ne.s32.totalorder %s144_s23, %s641_s7  ;;  %p650_p7 = scmp.lt.s32.totalorder %s641_s7, %s641_s7 }
  0x1f   : > { %p644_p9 = pnand %p642_p6, %p630_p0  ;;  %p651_p8 = por %p650_p7, %p649_p3 }
  0x21   : > { %p645_p11 = pneg %p644_p9 }
  0x23   : > { %p652_p12 = pnand %p651_p8, %p645_p11 }
  0x25   : > { %655 = shalt.err (!%p652_p12)
}
  0x26   : > { %s773_s8 = smov 128   ;;  %s774_s9 = smov 8  }
  0x27   : > { %561 = dma.hbm_to_vmem [thread:$0]  (!%p857_p10), %s1008_s1, 512, %s144_s23, [#allocation7], %s773_s8, %s773_s8, %s774_s9  }
  0x28   : > { %s27_s12 = sadd.s32 1, %s766_s16  ;;  %s160_s22 = sand.u32 1, %s758_s14  }
  0x29   : > { %p28_p3 = scmp.ge.s32.totalorder %s27_s12, 2  ;;  %s513_s27 = sshll.u32 %s160_s22, 6 }
  0x2a   : > { %s514_s28 = sshll.u32 %s766_s16, 7  ;;  %s164_s23 = scalar_lea.vmem [#allocation3], %s513_s27 }
  0x2b   : > { %s1033_s12 = smov (%p28_p3, %s27_s12), 0  ;;  %s894_s24 = scalar_lea.hbm %s1007_s0, %s514_s28 }
  0x2c   : > { %s35_s4 = ssub.s32 %s766_s16, %s1033_s12  ;;  %s173_s5 = sshll.u32 %s164_s23, 4  ;;  %s898_s5 = int_to_ptr.vmem [resolvable:$true] %s173_s5 }
  0x2d   : > { %p37_p7 = scmp.eq.s32.totalorder %s35_s4, 0  ;;  %s905_s7 = scalar_lea.sflag [#allocation4], %s160_s22 }
  0x2e   : > { %s656_s10 = scalar_lea.hbm %s894_s24, 1024  ;;  %p1021_p10 = scmp.ne.s32.totalorder %s1020_s26, 0 }
  0x2f   : > { %s903_s6 = scalar_select %p37_p7, %s758_s14, %s39_s25  }
  0x30   : > { %p657_p8 = scmp.ne.s32.totalorder %s894_s24, %s656_s10  ;;  %p658_p12 = pneg %p1021_p10 }
  0x31   : > { %s661_s27 = scalar_lea.hbm %s1007_s0, 2048  ;;  %p662_p1 = scmp.lt.u32.totalorder %s894_s24, %s1007_s0 }
  0x32   : > { %p659_p13 = pnand %p658_p12, %p657_p8  ;;  %p663_p2 = scmp.lt.u32.totalorder %s661_s27, %s656_s10 }
  0x33   : > { %p665_p5 = scmp.lt.u32.totalorder %s656_s10, %s894_s24 }
  0x34   : > { %p660_p0 = pneg %p659_p13  ;;  %p664_p4 = por %p663_p2, %p662_p1 }
  0x36   : > { %p666_p6 = por %p665_p5, %p664_p4 }
  0x38   : > { %p667_p9 = pnand %p666_p6, %p660_p0 }
  0x3a   : > { %670 = shalt.err (!%p667_p9)
}
  0x3b   : > { %s671_s25 = scalar_lea.vmem %s898_s5, 1024  ;;  %s775_s22 = smov [#allocation3]  }
  0x3c   : > { %p672_p11 = scmp.ne.s32.totalorder %s898_s5, %s671_s25  ;;  %s676_s4 = sshll.u32 %s775_s22, 4  ;;  %s677_s4 = int_to_ptr.vmem [resolvable:$false] %s676_s4 }
  0x3d   : > { %s678_s23 = scalar_lea.vmem %s677_s4, 2048  ;;  %p679_p8 = scmp.lt.s32.totalorder %s898_s5, %s677_s4 }
  0x3e   : > { %p674_p3 = pnand %p672_p11, %p658_p12  ;;  %p680_p13 = scmp.lt.s32.totalorder %s678_s23, %s671_s25 }
  0x40   : > { %p675_p7 = pneg %p674_p3  ;;  %p681_p1 = por %p680_p13, %p679_p8 }
  0x42   : > { %p682_p2 = pnand %p681_p1, %p675_p7 }
  0x44   : > { %685 = shalt.err (!%p682_p2)
}
  0x45   : > { %s776_s10 = smov 256   ;;  %p1022_p12 = scmp.ne.s32.totalorder %s1018_s21, 0 }
  0x46   : > { %565 = dma.hbm_to_vmem [thread:$0]  (!%p1021_p10), %s894_s24, 1024, %s898_s5, %s905_s7, %s776_s10, %s773_s8, %s774_s9  }
  0x47   : > { %185 = sbr.rel (%p1022_p12) target bundleno = 503 (0x1f7), region = 32  ;;  %s187_s11 = sand.u32 (!%p1022_p12), 1, %s754_s13  }
  0x48   : > { %s516_s28 = sshll.u32 (!%p1022_p12), %s187_s11, 6  ;;  %s188_s27 = scalar_lea.sflag (!%p1022_p12), [#allocation4], %s187_s11 }
  0x49   : > { %s938_s29 = scalar_lea.vmem (!%p1022_p12), [#allocation3], %s516_s28  ;;  %p1023_p0 = scmp.ne.s32.totalorder (!%p1022_p12), %s1017_s20, 0 }
  0x4e   : > { %737 = dma.done.wait (%p1023_p0), %s188_s27, 1024  }
  0x4f   : > { %739 = vsyncadd (%p1023_p0), %s188_s27, 4294966272  ;;  %p1024_p4 = scmp.ne.s32.totalorder %s1016_s19, 0 }
  0x51   : > { %741 = dma.done.wait (%p1024_p4), [#allocation7], 512  }
  0x52   : > { %743 = vsyncadd (%p1024_p4), [#allocation7], 4294966784  ;;  %p518_p10 = scmp.ne.s32.totalorder %s762_s15, 0 }
  0x53   : > { %v777_v0 = vmov (!%p518_p10), 0.0  }
  0x54   : > { %217 = sbr.rel (%p518_p10) target bundleno = 91 (0x5b), region = 44  ;;  %218 = vst [vmem:[#allocation2] sm:$0xff] (!%p518_p10), %v777_v0  ;;  %219 = vst [vmem:[#allocation2 + $0x8] sm:$0xff] (!%p518_p10), %v777_v0 }
  0x55   : > { %220 = vst [vmem:[#allocation2 + $0x10] sm:$0xff] (!%p518_p10), %v777_v0  ;;  %221 = vst [vmem:[#allocation2 + $0x18] sm:$0xff] (!%p518_p10), %v777_v0 }
  0x56   : > { %222 = vst [vmem:[#allocation2 + $0x20] sm:$0xff] (!%p518_p10), %v777_v0  ;;  %223 = vst [vmem:[#allocation2 + $0x28] sm:$0xff] (!%p518_p10), %v777_v0 }
  0x57   : > { %224 = vst [vmem:[#allocation2 + $0x30] sm:$0xff] (!%p518_p10), %v777_v0  ;;  %225 = vst [vmem:[#allocation2 + $0x38] sm:$0xff] (!%p518_p10), %v777_v0 }
  0x5b PF: > { %v226_v1 = vld [vmem:[%s938_s29] sm:$0xff]  ;;  %v227_v3 = vld [vmem:[%s938_s29 + $0x8] sm:$0xff]  ;;  %v228_v6 = vld [vmem:[%s938_s29 + $0x10] sm:$0xff]  ;;  %p519_p5 = scmp.ne.s32.totalorder %s762_s15, 1 }
  0x5c   : > { %v234_v2 = vld [vmem:[#allocation2] sm:$0xff]  ;;  %v235_v5 = vld [vmem:[#allocation2 + $0x8] sm:$0xff]  ;;  %v236_v7 = vld [vmem:[#allocation2 + $0x10] sm:$0xff]  ;;  %v778_v36 = vmov (!%p519_p5), 0.0|0.0   ;;  %vm779_vm0 = vmmov (!%p519_p5), 0   ;;  %v780_v40 = vmov (!%p519_p5), 0.0   ;;  %v305_v41 = vlaneseq (!%p519_p5) }
  0x5d   : > { %v242_v4 = vadd.f32 %v234_v2, %v226_v1  ;;  %v243_v8 = vadd.f32 %v235_v5, %v227_v3  ;;  %v244_v9 = vadd.f32 %v236_v7, %v228_v6  ;;  %v229_v10 = vld [vmem:[%s938_s29 + $0x18] sm:$0xff]  ;;  %v230_v12 = vld [vmem:[%s938_s29 + $0x20] sm:$0xff]  ;;  %v231_v15 = vld [vmem:[%s938_s29 + $0x28] sm:$0xff]  ;;  %261 = sbr.rel (%p519_p5) target bundleno = 478 (0x1de), region = 48  ;;  %542 = vmatprep.subr.bf16.mxu0 (!%p519_p5), %v778_v36  ;;  %539 = vmatprep.mubr.msk.f32.mxu0 (!%p519_p5), %vm779_vm0, %v780_v40  ;;  %vm316_vm1 = vcmask (!%p519_p5), 130112  }
  0x5e   : > { %v237_v11 = vld [vmem:[#allocation2 + $0x18] sm:$0xff]  ;;  %v238_v14 = vld [vmem:[#allocation2 + $0x20] sm:$0xff]  ;;  %v239_v16 = vld [vmem:[#allocation2 + $0x28] sm:$0xff]  ;;  %v306_v42 = vand.u32 (!%p519_p5), 127, %v305_v41  ;;  %v308_v47 = vshrl.u32 (!%p519_p5), %v305_v41, 7  ;;  %vm323_vm2 = vcmask (!%p519_p5), 195712  }
  0x5f   : > { %250 = vst [vmem:[#allocation2] sm:$0xff] %v242_v4  ;;  %v245_v13 = vadd.f32 %v237_v11, %v229_v10  ;;  %251 = vst [vmem:[#allocation2 + $0x8] sm:$0xff] %v243_v8  ;;  %v246_v17 = vadd.f32 %v238_v14, %v230_v12  ;;  %v247_v18 = vadd.f32 %v239_v16, %v231_v15  ;;  %v232_v19 = vld [vmem:[%s938_s29 + $0x30] sm:$0xff]  ;;  %v233_v21 = vld [vmem:[%s938_s29 + $0x38] sm:$0xff]  ;;  %vm330_vm3 = vcmask (!%p519_p5), 261312  }
  0x60   : > { %252 = vst [vmem:[#allocation2 + $0x10] sm:$0xff] %v244_v9  ;;  %v240_v20 = vld [vmem:[#allocation2 + $0x30] sm:$0xff]  ;;  %v241_v23 = vld [vmem:[#allocation2 + $0x38] sm:$0xff]  ;;  %v286_v33 = vld [vmem:[#allocation6] sm:$0xff] (!%p519_p5)  ;;  %v311_v45 = vadd.s32 (!%p519_p5), 4294967288, %v306_v42  ;;  %v318_v46 = vadd.s32 (!%p519_p5), 4294967280, %v306_v42  ;;  %v309_v53 = vsub.s32 (!%p519_p5), %v306_v42, %v308_v47 }
  0x61   : > { %253 = vst [vmem:[#allocation2 + $0x18] sm:$0xff] %v245_v13  ;;  %v248_v22 = vadd.f32 %v240_v20, %v232_v19  ;;  %254 = vst [vmem:[#allocation2 + $0x20] sm:$0xff] %v246_v17  ;;  %v249_v24 = vadd.f32 %v241_v23, %v233_v21  ;;  %v287_v34 = vld [vmem:[#allocation6 + $0x8] sm:$0xff] (!%p519_p5)  ;;  %v288_v37 = vld [vmem:[#allocation6 + $0x10] sm:$0xff] (!%p519_p5)  ;;  %v325_v51 = vadd.s32 (!%p519_p5), 4294967272, %v306_v42  ;;  %vm351_vm4 = vcmask (!%p519_p5), 1041409  }
  0x62   : > { %255 = vst [vmem:[#allocation2 + $0x28] sm:$0xff] %v247_v18  ;;  %v543_v35 = vpack.c.bf16 (!%p519_p5), %v287_v34, %v286_v33  ;;  %v289_v38 = vld [vmem:[#allocation6 + $0x18] sm:$0xff] (!%p519_p5)  ;;  %v314_v50 = vsub.s32 (!%p519_p5), %v311_v45, %v308_v47  ;;  %v321_v52 = vsub.s32 (!%p519_p5), %v318_v46, %v308_v47  ;;  %vm353_vm5 = vcmask (!%p519_p5), 261120   ;;  %v520_v10 = vld [vmem:[%s1009_s2] ss:$0 sm:$0xff] (!%p519_p5) }
  0x63   : > { %256 = vst [vmem:[#allocation2 + $0x30] sm:$0xff] %v248_v22  ;;  %257 = vst [vmem:[#allocation2 + $0x38] sm:$0xff] %v249_v24  ;;  %v546_v39 = vpack.c.bf16 (!%p519_p5), %v289_v38, %v288_v37  ;;  %v328_v58 = vsub.s32 (!%p519_p5), %v325_v51, %v308_v47 }
  0x64   : > { %544 = vmatpush3.bf16.msra.mxu0 %v543_v35 }
  0x65   : > { %545 = vmatprep.subr.bf16.mxu0 %v778_v36 }
  0x66   : > { %v262_v26 = vld [vmem:[#allocation2] sm:$0xff]  ;;  %v263_v28 = vld [vmem:[#allocation2 + $0x8] sm:$0xff] }
  0x67   : > { %270 = vadd.xlane.f32.xlu0 %v262_v26  ;;  %v264_v30 = vld [vmem:[#allocation2 + $0x10] sm:$0xff] }
  0x68   : > { %v266_v25 = vld [vmem:[#allocation2 + $0x20] sm:$0xff]  ;;  %v265_v32 = vld [vmem:[#allocation2 + $0x18] sm:$0xff]  ;;  %547 = vmatpush3.bf16.msra.mxu0 %v546_v39 }
  0x69   : > { %278 = vadd.xlane.f32.xlu1 %v266_v25  ;;  %v267_v27 = vld [vmem:[#allocation2 + $0x28] sm:$0xff] }
  0x6a   : > { %v268_v29 = vld [vmem:[#allocation2 + $0x30] sm:$0xff]  ;;  %v269_v31 = vld [vmem:[#allocation2 + $0x38] sm:$0xff] }
  0x6b   : > { %272 = vadd.xlane.f32.xlu0 %v263_v28 }
  0x6d   : > { %280 = vadd.xlane.f32.xlu1 %v267_v27 }
  0x6f   : > { %274 = vadd.xlane.f32.xlu0 %v264_v30 }
  0x71   : > { %282 = vadd.xlane.f32.xlu1 %v268_v29 }
  0x73   : > { %276 = vadd.xlane.f32.xlu0 %v265_v32 }
  0x75   : > { %284 = vadd.xlane.f32.xlu1 %v269_v31 }
  0xf4   : > { %v271_v44 = vpop.xlane.xlu0 %270 }
  0xf5   : > { %v310_v62 = vrot.slane %v271_v44, %v309_v53 }
  0xf6   : > { %v279_v43 = vpop.xlane.xlu1 %278 }
  0xf7   : > { %v335_v61 = vrot.slane %v279_v43, %v309_v53 }
  0xf8   : > { %v273_v49 = vpop.xlane.xlu0 %272 }
  0xf9   : > { %v315_v57 = vrot.slane %v273_v49, %v314_v50 }
  0xfa   : > { %v281_v48 = vpop.xlane.xlu1 %280 }
  0xfb   : > { %v339_v56 = vrot.slane %v281_v48, %v314_v50  ;;  %v317_v2 = vsel %vm316_vm1, %v315_v57, %v310_v62 }
  0xfc   : > { %v275_v55 = vpop.xlane.xlu0 %274 }
  0xfd   : > { %v322_v60 = vrot.slane %v275_v55, %v321_v52  ;;  %v340_v1 = vsel %vm316_vm1, %v339_v56, %v335_v61 }
  0xfe   : > { %v283_v54 = vpop.xlane.xlu1 %282 }
  0xff   : > { %v344_v59 = vrot.slane %v283_v54, %v321_v52  ;;  %v324_v6 = vsel %vm323_vm2, %v322_v60, %v317_v2 }
 0x100   : > { %v277_v0 = vpop.xlane.xlu0 %276 }
 0x101   : > { %v329_v4 = vrot.slane %v277_v0, %v328_v58  ;;  %v345_v5 = vsel %vm323_vm2, %v344_v59, %v340_v1 }
 0x102   : > { %v285_v63 = vpop.xlane.xlu1 %284 }
 0x103   : > { %v349_v3 = vrot.slane %v285_v63, %v328_v58  ;;  %v331_v8 = vsel %vm330_vm3, %v329_v4, %v324_v6 }
 0x105   : > { %v350_v7 = vsel %vm330_vm3, %v349_v3, %v345_v5 }
 0x106   : > { %v352_v9 = vsel %vm351_vm4, %v350_v7, %v331_v8 }
 0x107   : > { %540 = vmatmul.mubr.msk.f32.vlgmr.msra.gmra.mrb[0].mxu0 %vm353_vm5, %v352_v9 }
 0x1da   : > { %v422_v11 = vpop.f32.mrb[0].mxu0 }
 0x1db   : > { %v423_v12 = vadd.f32 %v520_v10, %v422_v11  ;;  %v541_v13 = vpop.f32.mrb[1].mxu0 }
 0x1dd   : > { %426 = vst [vmem:[#allocation8] sm:$0x3] %v423_v12 }
 0x1de PF: > { %p963_p6 = scmp.eq.s32.totalorder %s509_s18, 1  ;;  %s781_s21 = smov [#allocation8]  }
 0x1df   : > { %s436_s26 = sshll.u32 %s781_s21, 4  ;;  %s437_s26 = int_to_ptr.vmem [resolvable:$true] %s436_s26 }
 0x1e0   : > { %s686_s8 = scalar_lea.vmem %s437_s26, 32  ;;  %p693_p7 = scmp.lt.s32.totalorder %s437_s26, %s437_s26 }
 0x1e1   : > { %p687_p9 = scmp.ne.s32.totalorder %s437_s26, %s686_s8  ;;  %p694_p8 = scmp.lt.s32.totalorder %s686_s8, %s686_s8 }
 0x1e3   : > { %p688_p11 = pnand %p687_p9, %p963_p6  ;;  %p695_p13 = por %p694_p8, %p693_p7 }
 0x1e5   : > { %p689_p3 = pneg %p688_p11 }
 0x1e7   : > { %p696_p1 = pnand %p695_p13, %p689_p3 }
 0x1e9   : > { %699 = shalt.err (!%p696_p1)
}
 0x1ea   : > { %s700_s18 = scalar_lea.hbm %s1010_s3, 32 }
 0x1eb   : > { %p701_p2 = scmp.ne.s32.totalorder %s1010_s3, %s700_s18  ;;  %p706_p4 = scmp.lt.u32.totalorder %s700_s18, %s1010_s3 }
 0x1ed   : > { %p702_p12 = pnand %p701_p2, %p963_p6 }
 0x1ef   : > { %p703_p0 = pneg %p702_p12 }
 0x1f1   : > { %p708_p10 = pnand %p706_p4, %p703_p0 }
 0x1f3   : > { %711 = shalt.err (!%p708_p10)
}
 0x1f4   : > { %555 = dma.vmem_to_hbm [thread:$0]  (%p963_p6), %s437_s26, 32, %s1010_s3, [#allocation5]  }
 0x1f5   : > { %745 = dma.done.wait (%p963_p6), [#allocation5], 32  }
 0x1f6   : > { %747 = vsyncadd (%p963_p6), [#allocation5], 4294967264 }
 0x1f7 PF: > { %s18_s17 = sadd.s32 1, %s770_s17   ;;  %s1026_s23 = smov %s1033_s12 }
 0x1f8   : > { %p15_p5 = scmp.ge.s32.totalorder %s18_s17, 4   ;;  %s1027_s12 = smov %s754_s13 }
 0x1f9   : > { %s1028_s13 = smov %s758_s14  ;;  %s1029_s14 = smov %s903_s6 }
 0x1fa   : > { %s1030_s15 = smov %s766_s16  ;;  %s1031_s16 = smov %s1026_s23 }
 0x1fb   :  { %17 = sbr.rel (!%p15_p5) target bundleno = 6 (0x6), region = 82 }
 0x202   :  { %449 = vsyncpa [#allocation4], 1 }
 0x203   :  { %451 = vsyncpa [#allocation4 + $0x1], 1 }
 0x204   :  { %452 = vsyncpa [#allocation7], 1 }
 0x205   :  { %453 = vsyncpa [#allocation5], 1 }
 0x206   :  { %455 = vsyncpa [#allocation5 + $0x1], 1 }

</bundles_post_ra>
